<compile_context>
chip_gen: v7x
topology: tpu7x:2x2x1
jax: 0.10.0
libtpu: 0.0.40
codegen_flags: <defaults>
</compile_context>

<pallas_src>
import jax
import jax.numpy as jnp
from jax.experimental import pallas as pl
from jax.experimental.pallas import tpu as pltpu

HIDDEN = 64
K_PAD = 8  # layer-1 contraction depth after bias-fold + sublane padding


def _nn_heuristic_kernel(x_ref, w1_ref, w2_ref, b2_ref, w3_ref, b3_ref,
                         out_ref):
    # x_ref  : (8,  BT) bf16   rows 0..5 = features, row 6 = 1.0, row 7 = 0
    # w1_ref : (64, 8)  bf16   cols 0..5 = W1, col 6 = b1, col 7 = 0
    # w2_ref : (64, 64) bf16   PyTorch-native (out, in)
    # b2_ref : (64, 1)  f32
    # w3_ref : (64, 1)  f32    layer-3 weights as a column (VPU path)
    # b3_ref : (1,  1)  f32
    # out_ref: (1,  BT) f32    lane-dense output
    x = x_ref[...]

    # Layer 1 (bias folded into the matmul): (64,8) @ (8,BT) -> (64,BT) f32.
    h1 = jnp.dot(w1_ref[...], x, preferred_element_type=jnp.float32)
    # Fused ReLU + downcast: only the bf16 activation stays live / spills.
    h1b = jnp.maximum(h1, 0.0).astype(jnp.bfloat16)

    # Layer 2: (64,64) @ (64,BT) -> (64,BT) f32, bias + ReLU.
    h2 = jnp.dot(w2_ref[...], h1b, preferred_element_type=jnp.float32)
    h2 = jnp.maximum(h2 + b2_ref[...], 0.0)

    # Layer 3 (64 -> 1): VPU multiply + sublane reduction (XLU), + bias.
    out = jnp.sum(h2 * w3_ref[...], axis=0, keepdims=True) + b3_ref[...]
    out_ref[...] = out.astype(out_ref.dtype)


def _round_up(n, m):
    return ((n + m - 1) // m) * m


def _prep_params(params):
    """Pack params into kernel layout: bias-folded bf16 w1, bf16 w2, f32 rest."""
    w1, b1 = params["w1"], params["b1"]   # (64, in_dims), (64,)
    w2, b2 = params["w2"], params["b2"]   # (64, 64),      (64,)
    w3, b3 = params["w3"], params["b3"]   # (1, 64),       (1,)
    in_dims = w1.shape[1]

    w1_aug = jnp.zeros((HIDDEN, K_PAD), jnp.float32)
    w1_aug = w1_aug.at[:, :in_dims].set(w1.astype(jnp.float32))
    w1_aug = w1_aug.at[:, in_dims].set(b1.astype(jnp.float32))
    w1b = w1_aug.astype(jnp.bfloat16)                      # (64, 8)

    w2b = w2.astype(jnp.bfloat16)                          # (64, 64)
    b2c = b2.reshape(HIDDEN, 1).astype(jnp.float32)        # (64, 1)
    w3c = w3.reshape(HIDDEN, 1).astype(jnp.float32)        # (64, 1)
    b3c = b3.reshape(1, 1).astype(jnp.float32)             # (1, 1)
    return w1b, w2b, b2c, w3c, b3c


def _tile_plan(B, block_batch):
    """Choose (bt, num_tiles, b_pad) minimizing padding; >=2 tiles when big
    enough so v7x's two TensorCores both get work."""
    num_tiles = max(1, pl.cdiv(B, block_batch))
    bt = _round_up(pl.cdiv(B, num_tiles), 128)
    if num_tiles == 1 and _round_up(B, 128) >= 256:
        num_tiles = 2
        bt = _round_up(pl.cdiv(B, 2), 128)
    return bt, num_tiles, bt * num_tiles


def nn_heuristic_forward_transposed(xt, params, *, block_batch=4096):
    """Core fused forward. xt: (in_dims, B) features-on-sublanes, batch-on-lanes.
    Returns (1, B) f32. Use this entry point when the producer already has
    batch-on-lanes data to avoid the wrapper transpose pass."""
    in_dims, B = xt.shape
    w1b, w2b, b2c, w3c, b3c = _prep_params(params)

    bt, num_tiles, b_pad = _tile_plan(B, block_batch)

    # Single fused pad + cast pass: 8 sublanes, bias row = 1.0, row 7 = 0.
    x8 = jnp.zeros((K_PAD, b_pad), jnp.bfloat16)
    x8 = x8.at[in_dims, :].set(jnp.float32(1.0).astype(jnp.bfloat16))
    x8 = x8.at[:in_dims, :B].set(xt.astype(jnp.bfloat16))

    resident = lambda shape: pl.BlockSpec(shape, lambda i: (0, 0))

    flops = 2 * B * (K_PAD * HIDDEN + HIDDEN * HIDDEN + HIDDEN)
    bytes_accessed = int(
        x8.size * 2                       # bf16 input tiles
        + w1b.size * 2 + w2b.size * 2     # bf16 weights (VMEM-resident)
        + (b2c.size + w3c.size + b3c.size) * 4
        + b_pad * 4)                      # f32 output

    out_t = pl.pallas_call(
        _nn_heuristic_kernel,
        out_shape=jax.ShapeDtypeStruct((1, b_pad), jnp.float32),
        grid=(num_tiles,),
        in_specs=[
            pl.BlockSpec((K_PAD, bt), lambda i: (0, i)),   # streamed x tile
            resident(w1b.shape),
            resident(w2b.shape), resident(b2c.shape),
            resident(w3c.shape), resident(b3c.shape),
        ],
        out_specs=pl.BlockSpec((1, bt), lambda i: (0, i)),  # lane-dense out
        compiler_params=pltpu.CompilerParams(
            dimension_semantics=("parallel",)),  # 2 TCs on v7x; no-op v5e/v6e
        cost_estimate=pl.CostEstimate(
            flops=flops, transcendentals=0, bytes_accessed=bytes_accessed),
    )(x8, w1b, w2b, b2c, w3c, b3c)

    return out_t[:, :B]                                     # (1, B)


def nn_heuristic_forward(x, params, *, block_batch=4096):
    """PyTorch-layout convenience wrapper. x: (B, in_dims) f32 -> (B, 1) f32."""
    B = x.shape[0]
    out_t = nn_heuristic_forward_transposed(x.T, params,
                                            block_batch=block_batch)
    return out_t.reshape(B, 1)           # (1,B)->(B,1): metadata-only reshape


def init_params(key, input_dims=6, hidden=HIDDEN):
    """Deterministic init, PyTorch (out, in) weight layout, nonzero biases so
    the folded-bias path is actually exercised."""
    k1, k2, k3, kb1, kb2, kb3 = jax.random.split(key, 6)

    def xavier(k, fan_out, fan_in):
        limit = jnp.sqrt(6.0 / (fan_in + fan_out))
        return jax.random.uniform(k, (fan_out, fan_in), jnp.float32,
                                  minval=-limit, maxval=limit)

    def bias(k, n):
        return jax.random.uniform(k, (n,), jnp.float32, minval=-0.1, maxval=0.1)

    return {
        "w1": xavier(k1, hidden, input_dims), "b1": bias(kb1, hidden),
        "w2": xavier(k2, hidden, hidden),     "b2": bias(kb2, hidden),
        "w3": xavier(k3, 1, hidden),          "b3": bias(kb3, 1),
    }


def reference_forward(x, params):
    """Pure-JAX reference matching the kernel numerics: bias-folded bf16
    layer-1, bf16 layer-2 with f32 bias, exact f32 layer-3."""
    B = x.shape[0]
    in_dims = x.shape[1]
    x_aug = jnp.concatenate(
        [x, jnp.ones((B, 1), x.dtype)], axis=1).astype(jnp.bfloat16)
    w1_aug = jnp.concatenate(
        [params["w1"], params["b1"][:, None]], axis=1).astype(jnp.bfloat16)
    h1 = jax.nn.relu(jnp.dot(x_aug, w1_aug.T,
                             preferred_element_type=jnp.float32)
                     ).astype(jnp.bfloat16)
    h2 = jax.nn.relu(jnp.dot(h1, params["w2"].astype(jnp.bfloat16).T,
                             preferred_element_type=jnp.float32)
                     + params["b2"])
    return (jnp.dot(h2, params["w3"].T,
                    precision=jax.lax.Precision.HIGHEST) + params["b3"])


if __name__ == "__main__":
    key = jax.random.PRNGKey(0)
    k_x, k_p = jax.random.split(key)

    batch, input_dims = 8, 6
    x = jax.random.normal(k_x, (batch, input_dims), jnp.float32)
    params = init_params(k_p, input_dims=input_dims, hidden=HIDDEN)

    out = nn_heuristic_forward(x, params)
    out = jax.block_until_ready(out)
    assert out.shape == (batch, 1)

    ref = reference_forward(x, params)
    max_err = jnp.max(jnp.abs(out - ref))
    assert jnp.allclose(out, ref, atol=1e-4, rtol=1e-4), f"max |diff| = {max_err}"

    # Also exercise a multi-tile (>=2 grid steps) path with batch padding.
    batch2 = 300
    x2 = jax.random.normal(k_x, (batch2, input_dims), jnp.float32)
    out2 = jax.block_until_ready(nn_heuristic_forward(x2, params,
                                                      block_batch=128))
    ref2 = reference_forward(x2, params)
    assert out2.shape == (batch2, 1)
    assert jnp.allclose(out2, ref2, atol=1e-4, rtol=1e-4)

    print("KERNEL_OK")
</pallas_src>

<mosaic_0001>
module attributes {stable_mosaic.version = 11 : i64} {
  func.func @_nn_heuristic_kernel(%arg0: i32, %arg1: memref<8x128xbf16, #tpu.memory_space<vmem>>, %arg2: memref<64x8xbf16, #tpu.memory_space<vmem>>, %arg3: memref<64x64xbf16, #tpu.memory_space<vmem>>, %arg4: memref<64x1xf32, #tpu.memory_space<vmem>>, %arg5: memref<64x1xf32, #tpu.memory_space<vmem>>, %arg6: memref<1x1xf32, #tpu.memory_space<vmem>>, %arg7: memref<1x128xf32, #tpu.memory_space<vmem>>) attributes {dimension_semantics = [#tpu.dimension_semantics<parallel>], iteration_bounds = array<i64: 1>, scalar_prefetch = 0 : i64, scratch_operands = 0 : i64, tpu.core_type = #tpu.core_type<tc>, window_params = [{transform_indices = @transform_0, window_bounds = array<i64: 8, 128>}, {pipeline_mode = #tpu.pipeline_mode<synchronous>, transform_indices = @transform_1, window_bounds = array<i64: 64, 8>}, {pipeline_mode = #tpu.pipeline_mode<synchronous>, transform_indices = @transform_2, window_bounds = array<i64: 64, 64>}, {pipeline_mode = #tpu.pipeline_mode<synchronous>, transform_indices = @transform_3, window_bounds = array<i64: 64, 1>}, {pipeline_mode = #tpu.pipeline_mode<synchronous>, transform_indices = @transform_4, window_bounds = array<i64: 64, 1>}, {pipeline_mode = #tpu.pipeline_mode<synchronous>, transform_indices = @transform_5, window_bounds = array<i64: 1, 1>}, {transform_indices = @transform_6, window_bounds = array<i64: 1, 128>}]} {
    %c0 = arith.constant 0 : index
    %c0_0 = arith.constant 0 : index
    %0 = vector.load %arg1[%c0, %c0_0] : memref<8x128xbf16, #tpu.memory_space<vmem>>, vector<8x128xbf16>
    %c0_1 = arith.constant 0 : index
    %c0_2 = arith.constant 0 : index
    %1 = vector.load %arg2[%c0_1, %c0_2] : memref<64x8xbf16, #tpu.memory_space<vmem>>, vector<64x8xbf16>
    %cst = arith.constant dense<0.000000e+00> : vector<64x128xf32>
    %2 = tpu.matmul %1, %0, %cst {dimension_numbers = #tpu.dot_dimension_numbers<[1], [0], [0], [1], [0, 0, 1, 1], [], []>} : vector<64x8xbf16>, vector<8x128xbf16>, vector<64x128xf32> -> vector<64x128xf32>
    %cst_3 = arith.constant 0.000000e+00 : f32
    %3 = vector.broadcast %cst_3 : f32 to vector<64x128xf32>
    %4 = arith.maximumf %2, %3 : vector<64x128xf32>
    %5 = arith.truncf %4 : vector<64x128xf32> to vector<64x128xbf16>
    %c0_4 = arith.constant 0 : index
    %c0_5 = arith.constant 0 : index
    %6 = vector.load %arg3[%c0_4, %c0_5] : memref<64x64xbf16, #tpu.memory_space<vmem>>, vector<64x64xbf16>
    %cst_6 = arith.constant dense<0.000000e+00> : vector<64x128xf32>
    %7 = tpu.matmul %6, %5, %cst_6 {dimension_numbers = #tpu.dot_dimension_numbers<[1], [0], [0], [1], [0, 0, 1, 1], [], []>} : vector<64x64xbf16>, vector<64x128xbf16>, vector<64x128xf32> -> vector<64x128xf32>
    %c0_7 = arith.constant 0 : index
    %c0_8 = arith.constant 0 : index
    %8 = vector.load %arg4[%c0_7, %c0_8] : memref<64x1xf32, #tpu.memory_space<vmem>>, vector<64x1xf32>
    %9 = vector.broadcast %8 : vector<64x1xf32> to vector<64x128xf32>
    %10 = arith.addf %7, %9 : vector<64x128xf32>
    %cst_9 = arith.constant 0.000000e+00 : f32
    %11 = vector.broadcast %cst_9 : f32 to vector<64x128xf32>
    %12 = arith.maximumf %10, %11 : vector<64x128xf32>
    %c0_10 = arith.constant 0 : index
    %c0_11 = arith.constant 0 : index
    %13 = vector.load %arg5[%c0_10, %c0_11] : memref<64x1xf32, #tpu.memory_space<vmem>>, vector<64x1xf32>
    %14 = vector.broadcast %13 : vector<64x1xf32> to vector<64x128xf32>
    %15 = arith.mulf %12, %14 : vector<64x128xf32>
    %cst_12 = arith.constant dense<0.000000e+00> : vector<128xf32>
    %16 = vector.multi_reduction <add>, %15, %cst_12 [0] : vector<64x128xf32> to vector<128xf32>
    %17 = vector.shape_cast %16 : vector<128xf32> to vector<1x128xf32>
    %c0_13 = arith.constant 0 : index
    %c0_14 = arith.constant 0 : index
    %18 = vector.load %arg6[%c0_13, %c0_14] : memref<1x1xf32, #tpu.memory_space<vmem>>, vector<1x1xf32>
    %19 = vector.broadcast %18 : vector<1x1xf32> to vector<1x128xf32>
    %20 = arith.addf %17, %19 : vector<1x128xf32>
    %c0_15 = arith.constant 0 : index
    %c0_16 = arith.constant 0 : index
    %21 = vector.load %arg7[%c0_15, %c0_16] : memref<1x128xf32, #tpu.memory_space<vmem>>, vector<1x128xf32>
    tpu.vector_store %arg7[%c0_15, %c0_16], %20 {strides = array<i32>} : memref<1x128xf32, #tpu.memory_space<vmem>>, vector<1x128xf32>,
    return
  }
  func.func @transform_0(%arg0: i32) -> (i32, i32) {
    %c0_i32 = arith.constant 0 : i32
    %c0_i32_0 = arith.constant 0 : i32
    return %c0_i32, %arg0 : i32, i32
  }
  func.func @transform_1(%arg0: i32) -> (i32, i32) {
    %c0_i32 = arith.constant 0 : i32
    %c0_i32_0 = arith.constant 0 : i32
    %c0_i32_1 = arith.constant 0 : i32
    return %c0_i32, %c0_i32_0 : i32, i32
  }
  func.func @transform_2(%arg0: i32) -> (i32, i32) {
    %c0_i32 = arith.constant 0 : i32
    %c0_i32_0 = arith.constant 0 : i32
    %c0_i32_1 = arith.constant 0 : i32
    return %c0_i32, %c0_i32_0 : i32, i32
  }
  func.func @transform_3(%arg0: i32) -> (i32, i32) {
    %c0_i32 = arith.constant 0 : i32
    %c0_i32_0 = arith.constant 0 : i32
    %c0_i32_1 = arith.constant 0 : i32
    return %c0_i32, %c0_i32_0 : i32, i32
  }
  func.func @transform_4(%arg0: i32) -> (i32, i32) {
    %c0_i32 = arith.constant 0 : i32
    %c0_i32_0 = arith.constant 0 : i32
    %c0_i32_1 = arith.constant 0 : i32
    return %c0_i32, %c0_i32_0 : i32, i32
  }
  func.func @transform_5(%arg0: i32) -> (i32, i32) {
    %c0_i32 = arith.constant 0 : i32
    %c0_i32_0 = arith.constant 0 : i32
    %c0_i32_1 = arith.constant 0 : i32
    return %c0_i32, %c0_i32_0 : i32, i32
  }
  func.func @transform_6(%arg0: i32) -> (i32, i32) {
    %c0_i32 = arith.constant 0 : i32
    %c0_i32_0 = arith.constant 0 : i32
    return %c0_i32, %arg0 : i32, i32
  }
}

</mosaic_0001>

<bundles_post_ra>
// kernel: tpu_custom_call.1
= control target key start
LH: loop header
LB: loop body
LE: loop exit
PB: predicated region body
PF: predicated region fallthrough
CT: control target
= control target key end

     0   :  { %s638_s0 = inlined_call_operand.vmem [shape: bf16[8,128], index: 0, kind: input, shape index: {}]   ;;  %s639_s1 = inlined_call_operand.vmem [shape: bf16[64,8], index: 1, kind: input, shape index: {}]   ;;  %s640_s2 = inlined_call_operand.vmem [shape: bf16[64,64], index: 2, kind: input, shape index: {}]   ;;  %s641_s3 = inlined_call_operand.vmem [shape: f32[64,1], index: 3, kind: input, shape index: {}]   ;;  %s642_s4 = inlined_call_operand.vmem [shape: f32[64,1], index: 4, kind: input, shape index: {}]   ;;  %s643_s5 = inlined_call_operand.<no memory space> [shape: f32[1,1], index: 5, kind: input, shape index: {}]   ;;  %s644_s6 = inlined_call_operand.hbm [shape: f32[1,128], index: 6, kind: output, shape index: {}]  }
   0x1   :  { %v11_v0 = vstv %s643_s5 }
   0x2   :  { %12 = vst [vmem:[#allocation2] sm:$0x1] %v11_v0 }
   0x3   :  { %v27_v1 = vld [vmem:[%s638_s0] sm:$0xf]  ;;  %vm69_vm0 = vcmask 1043456   ;;  %vm56_vm1 = vcmask 64512   ;;  %v476_v4 = vld [vmem:[%s639_s1 + $0x8] sm:$0xff]   ;;  %v477_v5 = vld [vmem:[%s639_s1 + $0x10] sm:$0xff]  }
   0x4   :  { %v475_v2 = vld [vmem:[%s639_s1] sm:$0xff]   ;;  %470 = vmatprep.subr.msk.bf16.mxu0 %vm69_vm0, %v27_v1  ;;  %v71_v3 = vsel %vm69_vm0, %v27_v1, 0 }
   0x5   :  { %437 = vmatpush3.bf16.msra.mxu0 %v71_v3  ;;  %438 = vmatprep.mubr.msk.bf16.mxu0 %vm56_vm1, %v475_v2 }
   0x8   :  { %439 = vmatmul.mubr.msk.bf16.vlgmr.msra.gmra.mrb[0].mxu0 %vm56_vm1, %v476_v4 }
   0x9   :  { %442 = vmatprep.mubr.msk.bf16.mxu0 %vm56_vm1, %v477_v5 }
   0xa   :  { %13 = vsyncpa [#allocation4], 0  ;;  %v478_v6 = vld [vmem:[%s639_s1 + $0x18] sm:$0xff]   ;;  %v479_v7 = vld [vmem:[%s640_s2] sm:$0xff]   ;;  %vm226_vm2 = vcmask 523264   ;;  %v507_v11 = vmov 0  }
   0xb   :  { %v480_v8 = vld [vmem:[%s640_s2 + $0x10] sm:$0xff]   ;;  %v158_v9 = vld [vmem:[%s641_s3] sm:$0xff]  ;;  %473 = vset.pattern.permute.xlu0 %v507_v11  ;;  %474 = vset.pattern.permute.xlu1 %v507_v11  ;;  %v159_v12 = vld [vmem:[%s641_s3 + $0x8] sm:$0xff] }
   0xc   :  { %458 = vmatprep.mubr.msk.bf16.mxu1 %vm226_vm2, %v480_v8  ;;  %v160_v10 = vld [vmem:[%s641_s3 + $0x10] sm:$0xff]  ;;  %168 = vperm.xlu0 %473, %v158_v9   ;;  %v161_v13 = vld [vmem:[%s641_s3 + $0x18] sm:$0xff]  ;;  %v312_v14 = vld [vmem:[%s642_s4] sm:$0xff] }
   0xd   :  { %178 = vperm.xlu1 %474, %v160_v10   ;;  %v313_v15 = vld [vmem:[%s642_s4 + $0x8] sm:$0xff]  ;;  %v162_v16 = vld [vmem:[%s641_s3 + $0x20] sm:$0xff]  ;;  %v314_v17 = vld [vmem:[%s642_s4 + $0x10] sm:$0xff] }
   0xe   :  { %v163_v18 = vld [vmem:[%s641_s3 + $0x28] sm:$0xff]  ;;  %v315_v19 = vld [vmem:[%s642_s4 + $0x18] sm:$0xff]  ;;  %v164_v20 = vld [vmem:[%s641_s3 + $0x30] sm:$0xff] }
   0xf   :  { %v316_v21 = vld [vmem:[%s642_s4 + $0x20] sm:$0xff]  ;;  %v165_v22 = vld [vmem:[%s641_s3 + $0x38] sm:$0xff]  ;;  %v317_v23 = vld [vmem:[%s642_s4 + $0x28] sm:$0xff] }
  0x10   :  { %443 = vmatmul.mubr.msk.bf16.gmra.mrb[4].mxu0 %vm56_vm1, %v478_v6  ;;  %173 = vperm.xlu0 %473, %v159_v12   ;;  %v318_v24 = vld [vmem:[%s642_s4 + $0x30] sm:$0xff]  ;;  %v319_v25 = vld [vmem:[%s642_s4 + $0x38] sm:$0xff]  ;;  %v381_v26 = vld [vmem:[#allocation2] sm:$0x1] }
  0x11   :  { %454 = vmatprep.mubr.msk.bf16.mxu0 %vm226_vm2, %v479_v7  ;;  %183 = vperm.xlu1 %474, %v161_v13   ;;  %v481_v47 = vld [vmem:[%s640_s2 + $0x8] sm:$0xff]   ;;  %v482_v48 = vld [vmem:[%s640_s2 + $0x18] sm:$0xff]   ;;  %s508_s2 = smov [#allocation3]  }
  0x12   :  { %s399_s17 = sshll.u32 %s508_s2, 4  ;;  %s400_s17 = int_to_ptr.vmem [resolvable:$true] %s399_s17 }
  0x13   :  { %s483_s18 = scalar_lea.vmem %s400_s17, 16  ;;  %s487_s19 = scalar_lea.vmem %s400_s17, 32 }
  0x14   :  { %322 = vperm.xlu0 %473, %v312_v14   ;;  %p484_p0 = scmp.ne.s32.totalorder %s400_s17, %s483_s18  ;;  %p488_p1 = scmp.lt.s32.totalorder %s400_s17, %s400_s17 }
  0x15   :  { %327 = vperm.xlu1 %474, %v313_v15   ;;  %p489_p2 = scmp.lt.s32.totalorder %s487_s19, %s483_s18 }
  0x17   :  { %p490_p3 = por %p489_p2, %p488_p1 }
  0x18   :  { %188 = vperm.xlu0 %473, %v162_v16  }
  0x19   :  { %332 = vperm.xlu1 %474, %v314_v17   ;;  %p491_p4 = pnand %p490_p3, %p484_p0 }
  0x1c   :  { %193 = vperm.xlu0 %473, %v163_v18  }
  0x1d   :  { %337 = vperm.xlu1 %474, %v315_v19  }
  0x20   :  { %198 = vperm.xlu0 %473, %v164_v20  }
  0x21   :  { %342 = vperm.xlu1 %474, %v316_v21  }
  0x24   :  { %203 = vperm.xlu0 %473, %v165_v22  }
  0x25   :  { %347 = vperm.xlu1 %474, %v317_v23  }
  0x28   :  { %352 = vperm.xlu0 %473, %v318_v24  }
  0x29   :  { %357 = vperm.xlu1 %474, %v319_v25  }
  0x2c   :  { %384 = vperm.xlu0 %473, %v381_v26  }
  0x8b   :  { %v169_v49 = vpop.permute.xlu0 %168 }
  0x8c   :  { %v179_v50 = vpop.permute.xlu1 %178 }
  0x8f   :  { %v174_v51 = vpop.permute.xlu0 %173 }
  0x90   :  { %v184_v52 = vpop.permute.xlu1 %183 }
  0x93   :  { %v323_v53 = vpop.permute.xlu0 %322 }
  0x94   :  { %v328_v54 = vpop.permute.xlu1 %327 }
  0x97   :  { %v189_v55 = vpop.permute.xlu0 %188 }
  0x98   :  { %v333_v56 = vpop.permute.xlu1 %332 }
  0x9b   :  { %v194_v57 = vpop.permute.xlu0 %193 }
  0x9c   :  { %v338_v58 = vpop.permute.xlu1 %337 }
  0x9f   :  { %v199_v8 = vpop.permute.xlu0 %198 }
  0xa0   :  { %v343_v12 = vpop.permute.xlu1 %342 }
  0xa3   :  { %v204_v21 = vpop.permute.xlu0 %203 }
  0xa4   :  { %v348_v26 = vpop.permute.xlu1 %347 }
  0xdb   :  { %v440_v27 = vpop.f32.mrb[0].mxu0 }
  0xdc   :  { %v107_v28 = vpop.f32.mrb[1].mxu0  ;;  %v140_v30 = vmax.f32 %v440_v27, 0.0 }
  0xdd   :  { %v441_v29 = vpop.f32.mrb[2].mxu0  ;;  %v138_v33 = vmax.f32 %v107_v28, 0.0 }
  0xde   :  { %v141_v31 = vmax.f32 %v441_v29, 0.0  ;;  %v110_v32 = vpop.f32.mrb[3].mxu0 }
  0xdf   :  { %v139_v34 = vmax.f32 %v110_v32, 0.0 }
  0xe0   :  { %v147_v35 = vpack.c.bf16 %v141_v31, %v140_v30 }
  0xe1   :  { %v146_v36 = vpack.c.bf16 %v139_v34, %v138_v33  ;;  %v353_v33 = vpop.permute.xlu0 %352 }
  0xe3   :  { %v444_v37 = vpop.f32.mrb[4].mxu0  ;;  %446 = vmatprep.subr.bf16.mxu0 %v146_v36  ;;  %462 = vmatprep.subr.bf16.mxu1 %v146_v36 }
  0xe4   :  { %v123_v38 = vpop.f32.mrb[5].mxu0  ;;  %447 = vmatpush3.bf16.msra.mxu0 %v146_v36  ;;  %466 = vmatpush3.bf16.msra.mxu1 %v146_v36  ;;  %v144_v40 = vmax.f32 %v444_v37, 0.0  ;;  %v358_v36 = vpop.permute.xlu1 %357 }
  0xe5   :  { %v445_v39 = vpop.f32.mrb[6].mxu0  ;;  %448 = vmatprep.subr.bf16.mxu0 %v147_v35  ;;  %463 = vmatprep.subr.bf16.mxu1 %v147_v35  ;;  %v142_v43 = vmax.f32 %v123_v38, 0.0 }
  0xe6   :  { %v145_v41 = vmax.f32 %v445_v39, 0.0  ;;  %v126_v42 = vpop.f32.mrb[7].mxu0  ;;  %v387_v39 = vlaneseq }
  0xe7   :  { %v143_v44 = vmax.f32 %v126_v42, 0.0 }
  0xe8   :  { %v149_v45 = vpack.c.bf16 %v145_v41, %v144_v40  ;;  %449 = vmatpush3.bf16.msra.mxu0 %v147_v35  ;;  %467 = vmatpush3.bf16.msra.mxu1 %v147_v35  ;;  %v388_v42 = vshrl.u32 %v387_v39, 7 }
  0xe9   :  { %v148_v46 = vpack.c.bf16 %v143_v44, %v142_v43 }
  0xeb   :  { %450 = vmatprep.subr.bf16.mxu0 %v148_v46  ;;  %464 = vmatprep.subr.bf16.mxu1 %v148_v46 }
  0xec   :  { %451 = vmatpush3.bf16.msra.mxu0 %v148_v46  ;;  %468 = vmatpush3.bf16.msra.mxu1 %v148_v46 }
  0xed   :  { %452 = vmatprep.subr.bf16.mxu0 %v149_v45  ;;  %465 = vmatprep.subr.bf16.mxu1 %v149_v45 }
  0xf0   :  { %453 = vmatpush3.bf16.msra.mxu0 %v149_v45  ;;  %469 = vmatpush3.bf16.msra.mxu1 %v149_v45  ;;  %v389_v45 = vsub.s32 0, %v388_v42 }
  0xf3   :  { %455 = vmatmul.mubr.msk.bf16.vlgmr.msra.gmra.mrb[8].mxu0 %vm226_vm2, %v481_v47  ;;  %459 = vmatmul.mubr.msk.bf16.vlgmr.msra.gmra.mrb[0].mxu1 %vm226_vm2, %v482_v48  ;;  %v385_v47 = vpop.permute.xlu0 %384 }
 0x1c6   :  { %v456_v59 = vpop.f32.mrb[8].mxu0  ;;  %v460_v60 = vpop.f32.mrb[0].mxu1 }
 0x1c7   :  { %v273_v61 = vpop.f32.mrb[9].mxu0  ;;  %v289_v62 = vpop.f32.mrb[1].mxu1  ;;  %v282_v63 = vadd.f32 %v456_v59, %v179_v50  ;;  %v298_v18 = vadd.f32 %v460_v60, %v199_v8 }
 0x1c8   :  { %v274_v0 = vadd.f32 %v273_v61, %v169_v49  ;;  %v457_v1 = vpop.f32.mrb[10].mxu0  ;;  %v461_v2 = vpop.f32.mrb[2].mxu1  ;;  %v290_v10 = vadd.f32 %v289_v62, %v189_v55  ;;  %v390_v49 = vrot.slane %v385_v47, %v389_v45 }
 0x1c9   :  { %v276_v3 = vpop.f32.mrb[11].mxu0  ;;  %v292_v4 = vpop.f32.mrb[3].mxu1  ;;  %v285_v6 = vadd.f32 %v457_v1, %v184_v52  ;;  %v306_v9 = vmax.f32 %v282_v63, 0.0  ;;  %v301_v23 = vadd.f32 %v461_v2, %v204_v21  ;;  %v310_v27 = vmax.f32 %v298_v18, 0.0 }
 0x1ca   :  { %v304_v5 = vmax.f32 %v274_v0, 0.0  ;;  %v277_v7 = vadd.f32 %v276_v3, %v174_v51  ;;  %v293_v16 = vadd.f32 %v292_v4, %v194_v57  ;;  %v308_v19 = vmax.f32 %v290_v10, 0.0 }
 0x1cb   :  { %v307_v14 = vmax.f32 %v285_v6, 0.0  ;;  %v362_v17 = vmul.f32 %v333_v56, %v306_v9  ;;  %v311_v30 = vmax.f32 %v301_v23, 0.0  ;;  %v366_v34 = vmul.f32 %v353_v33, %v310_v27 }
 0x1cc   :  { %v305_v11 = vmax.f32 %v277_v7, 0.0  ;;  %v360_v13 = vmul.f32 %v323_v53, %v304_v5  ;;  %v309_v25 = vmax.f32 %v293_v16, 0.0  ;;  %v364_v28 = vmul.f32 %v343_v12, %v308_v19 }
 0x1cd   :  { %v363_v22 = vmul.f32 %v338_v58, %v307_v14  ;;  %v367_v37 = vmul.f32 %v358_v36, %v311_v30 }
 0x1ce   :  { %v361_v15 = vmul.f32 %v328_v54, %v305_v11  ;;  %v365_v31 = vmul.f32 %v348_v26, %v309_v25 }
 0x1d0   :  { %v368_v20 = vadd.f32 %v361_v15, %v360_v13 }
 0x1d2   :  { %v369_v24 = vadd.f32 %v368_v20, %v362_v17 }
 0x1d4   :  { %v370_v29 = vadd.f32 %v369_v24, %v363_v22 }
 0x1d6   :  { %v371_v32 = vadd.f32 %v370_v29, %v364_v28 }
 0x1d8   :  { %v372_v35 = vadd.f32 %v371_v32, %v365_v31 }
 0x1da   :  { %v373_v38 = vadd.f32 %v372_v35, %v366_v34 }
 0x1dc   :  { %v374_v40 = vadd.f32 %v373_v38, %v367_v37 }
 0x1de   :  { %v375_v41 = vrot.slane %v374_v40, 4 }
 0x1e0   :  { %v376_v43 = vadd.f32 %v375_v41, %v374_v40 }
 0x1e2   :  { %v377_v44 = vrot.slane %v376_v43, 2 }
 0x1e4   :  { %v378_v46 = vadd.f32 %v377_v44, %v376_v43 }
 0x1e6   :  { %v379_v48 = vrot.slane %v378_v46, 1 }
 0x1e8   :  { %v380_v50 = vadd.f32 %v379_v48, %v378_v46 }
 0x1ea   :  { %v391_v51 = vadd.f32 %v390_v49, %v380_v50 }
 0x1ec   :  { %392 = vst [vmem:[#allocation3] sm:$0x1] %v391_v51 }
 0x1ed   :  { %494 = shalt.err (!%p491_p4)
}
 0x1ee   :  { %s495_s22 = scalar_lea.hbm %s644_s6, 16 }
 0x1ef   :  { %p496_p5 = scmp.ne.s32.totalorder %s644_s6, %s495_s22  ;;  %p499_p6 = scmp.lt.u32.totalorder %s495_s22, %s644_s6 }
 0x1f1   :  { %p501_p7 = pnand %p499_p6, %p496_p5 }
 0x1f3   :  { %504 = shalt.err (!%p501_p7)
}
 0x1f4   :  { %402 = dma.vmem_to_hbm [thread:$0]  %s400_s17, 16, %s644_s6, [#allocation4]  }
 0x1f5   :  { %505 = dma.done.wait [#allocation4], 16  }
 0x1f6   :  { %506 = vsyncadd [#allocation4], 4294967280 }
 0x1f7   :  { %406 = vsyncpa [#allocation4], 1 }

</bundles_post_ra>
